<compile_context>
chip_gen: v7x
topology: tpu7x:2x2x1
jax: 0.10.0
libtpu: 0.0.40
codegen_flags: <defaults>
</compile_context>

<pallas_src>
import functools

import jax
import jax.numpy as jnp
from jax.experimental import pallas as pl
from jax.experimental.pallas import tpu as pltpu

LANES = 128
MAX_TILE_ROWS = 2048  # (2048,128) f32 * 2 streams * 2 buffers = 4 MiB -> fits every gen


def _qfocal_kernel(pred_ref, true_ref, out_ref, acc_ref, *,
                   gamma, inv_n, n, tile_rows, needs_mask):
    i = pl.program_id(0)

    @pl.when(i == 0)
    def _():
        acc_ref[...] = jnp.zeros_like(acc_ref)

    x = pred_ref[...].astype(jnp.float32)
    y = true_ref[...].astype(jnp.float32)
    rows, lanes = x.shape

    # e = exp(-|x|) is reused for both the stable BCE term and the sigmoid:
    #   BCE        = max(x,0) - x*y + log1p(e)
    #   sigmoid(x) = 1/(1+e)  if x >= 0   else   e/(1+e)
    e = jnp.exp(-jnp.abs(x))
    bce = jnp.maximum(x, 0.0) - x * y + jnp.log1p(e)
    sig = jnp.where(x >= 0.0, 1.0, e) / (1.0 + e)

    d = jnp.abs(y - sig)
    if gamma == 1.5:
        mod = d * jnp.sqrt(d)          # 1 EUP op instead of exp(gamma*log(d))
    elif gamma == 2.0:
        mod = d * d
    elif gamma == 1.0:
        mod = d
    else:
        mod = jnp.power(d, gamma)      # general non-integer gamma

    loss = bce * mod

    if needs_mask:
        # Only emitted when padded / ragged elements actually exist (static).
        row_ids = jax.lax.broadcasted_iota(jnp.int32, (rows, lanes), 0)
        col_ids = jax.lax.broadcasted_iota(jnp.int32, (rows, lanes), 1)
        flat_idx = (i * tile_rows + row_ids) * lanes + col_ids
        loss = jnp.where(flat_idx < n, loss, 0.0)

    # Per-tile partial reduction onto a single (8,128) vreg: pure VPU adds.
    acc_ref[...] += jnp.sum(loss.reshape(rows // 8, 8, lanes), axis=0)

    @pl.when(i == pl.num_programs(0) - 1)
    def _():
        # One cross-lane/sublane XLU reduce for the whole kernel + mean scale.
        out_ref[...] = jnp.sum(acc_ref[...], keepdims=True) * inv_n


def qfocal_loss(pred, true, gamma=1.5, alpha=0.25):
    # alpha is stored by the module but unused in its forward (spec parity).
    assert pred.shape == true.shape
    n = pred.size

    flat_pred = pred.reshape(-1)
    flat_true = true.reshape(-1)

    # Minimal pad: only up to a multiple of 8*128 so the lane-dense (rows,128)
    # reshape is valid (<= 1023 extra elements; none for the shipped shape).
    pad_unit = 8 * LANES
    padded_n = pl.cdiv(n, pad_unit) * pad_unit
    if padded_n != n:
        flat_pred = jnp.pad(flat_pred, (0, padded_n - n))
        flat_true = jnp.pad(flat_true, (0, padded_n - n))

    rows = padded_n // LANES
    pred2d = flat_pred.reshape(rows, LANES)
    true2d = flat_true.reshape(rows, LANES)

    tile_rows = min(rows, MAX_TILE_ROWS)          # multiple of 8 by construction
    num_tiles = pl.cdiv(rows, tile_rows)          # ragged last tile allowed
    needs_mask = (num_tiles * tile_rows * LANES) != n

    kernel = functools.partial(
        _qfocal_kernel,
        gamma=float(gamma),
        inv_n=1.0 / float(n),
        n=n,
        tile_rows=tile_rows,
        needs_mask=needs_mask,
    )

    tile_spec = pl.BlockSpec((tile_rows, LANES), lambda i: (i, 0))

    out = pl.pallas_call(
        kernel,
        out_shape=jax.ShapeDtypeStruct((1, 1), jnp.float32),
        grid_spec=pltpu.PrefetchScalarGridSpec(
            num_scalar_prefetch=0,
            grid=(num_tiles,),
            in_specs=[tile_spec, tile_spec],
            out_specs=pl.BlockSpec((1, 1), lambda i: (0, 0)),
            scratch_shapes=[pltpu.VMEM((8, LANES), jnp.float32)],
        ),
        compiler_params=pltpu.CompilerParams(
            dimension_semantics=("arbitrary",)),
    )(pred2d, true2d)

    return out[0, 0]


def _reference(pred, true, gamma=1.5):
    # Pure-JAX reference matching the provided PyTorch module's forward.
    x = pred.astype(jnp.float32)
    y = true.astype(jnp.float32)
    bce = jnp.maximum(x, 0.0) - x * y + jnp.log1p(jnp.exp(-jnp.abs(x)))
    mod = jnp.abs(y - jax.nn.sigmoid(x)) ** gamma
    return jnp.mean(bce * mod)


if __name__ == "__main__":
    key = jax.random.PRNGKey(0)
    k1, k2 = jax.random.split(key)
    # NCHW logits and targets in [0,1], as typical for QFocalLoss objectness/cls.
    pred = jax.random.normal(k1, (2, 4, 16, 16), dtype=jnp.float32)
    true = jax.random.uniform(k2, (2, 4, 16, 16), dtype=jnp.float32)

    out = qfocal_loss(pred, true, gamma=1.5, alpha=0.25)
    out = jax.block_until_ready(out)

    ref = _reference(pred, true, gamma=1.5)
    assert jnp.allclose(out, ref, rtol=1e-4, atol=1e-6), (out, ref)
    print("KERNEL_OK")
</pallas_src>

<mosaic_0001>
module attributes {stable_mosaic.version = 11 : i64} {
  func.func @_qfocal_kernel(%arg0: i32, %arg1: memref<16x128xf32, #tpu.memory_space<vmem>>, %arg2: memref<16x128xf32, #tpu.memory_space<vmem>>, %arg3: memref<1x1xf32, #tpu.memory_space<vmem>>, %arg4: memref<8x128xf32, #tpu.memory_space<vmem>>) attributes {dimension_semantics = [#tpu.dimension_semantics<arbitrary>], iteration_bounds = array<i64: 1>, scalar_prefetch = 0 : i64, scratch_operands = 1 : i64, tpu.core_type = #tpu.core_type<tc>, window_params = [{transform_indices = @transform_0, window_bounds = array<i64: 16, 128>}, {transform_indices = @transform_1, window_bounds = array<i64: 16, 128>}, {pipeline_mode = #tpu.pipeline_mode<synchronous>, transform_indices = @transform_2, window_bounds = array<i64: 1, 1>}]} {
    %c0_i32 = arith.constant 0 : i32
    %0 = arith.cmpi eq, %arg0, %c0_i32 : i32
    %1 = arith.extui %0 : i1 to i32
    %c0_i32_0 = arith.constant 0 : i32
    %2 = arith.cmpi ne, %1, %c0_i32_0 : i32
    scf.if %2 {
      %cst_15 = arith.constant 0.000000e+00 : f32
      %35 = vector.broadcast %cst_15 : f32 to vector<8x128xf32>
      %c0_16 = arith.constant 0 : index
      %c0_17 = arith.constant 0 : index
      %36 = vector.load %arg4[%c0_16, %c0_17] : memref<8x128xf32, #tpu.memory_space<vmem>>, vector<8x128xf32>
      tpu.vector_store %arg4[%c0_16, %c0_17], %35 {strides = array<i32>} : memref<8x128xf32, #tpu.memory_space<vmem>>, vector<8x128xf32>,
    } else {
    }
    %c0 = arith.constant 0 : index
    %c0_1 = arith.constant 0 : index
    %3 = vector.load %arg1[%c0, %c0_1] : memref<16x128xf32, #tpu.memory_space<vmem>>, vector<16x128xf32>
    %c0_2 = arith.constant 0 : index
    %c0_3 = arith.constant 0 : index
    %4 = vector.load %arg2[%c0_2, %c0_3] : memref<16x128xf32, #tpu.memory_space<vmem>>, vector<16x128xf32>
    %5 = math.absf %3 : vector<16x128xf32>
    %cst = arith.constant 0.000000e+00 : f32
    %6 = vector.broadcast %cst : f32 to vector<16x128xf32>
    %7 = arith.subf %6, %5 : vector<16x128xf32>
    %8 = math.exp %7 : vector<16x128xf32>
    %cst_4 = arith.constant 0.000000e+00 : f32
    %9 = vector.broadcast %cst_4 : f32 to vector<16x128xf32>
    %10 = arith.maximumf %3, %9 : vector<16x128xf32>
    %11 = arith.mulf %3, %4 : vector<16x128xf32>
    %12 = arith.subf %10, %11 : vector<16x128xf32>
    %13 = math.log1p %8 : vector<16x128xf32>
    %14 = arith.addf %12, %13 : vector<16x128xf32>
    %cst_5 = arith.constant 0.000000e+00 : f32
    %15 = vector.broadcast %cst_5 : f32 to vector<16x128xf32>
    %16 = arith.cmpf oge, %3, %15 : vector<16x128xf32>
    %cst_6 = arith.constant 1.000000e+00 : f32
    %17 = vector.broadcast %cst_6 : f32 to vector<16x128xf32>
    %18 = arith.select %16, %17, %8 : vector<16x128xi1>, vector<16x128xf32>
    %cst_7 = arith.constant 1.000000e+00 : f32
    %19 = vector.broadcast %cst_7 : f32 to vector<16x128xf32>
    %20 = arith.addf %19, %8 : vector<16x128xf32>
    %21 = arith.divf %18, %20 : vector<16x128xf32>
    %22 = arith.subf %4, %21 : vector<16x128xf32>
    %23 = math.absf %22 : vector<16x128xf32>
    %24 = math.sqrt %23 : vector<16x128xf32>
    %25 = arith.mulf %23, %24 : vector<16x128xf32>
    %26 = arith.mulf %14, %25 : vector<16x128xf32>
    %c0_8 = arith.constant 0 : index
    %c0_9 = arith.constant 0 : index
    %27 = vector.load %arg4[%c0_8, %c0_9] : memref<8x128xf32, #tpu.memory_space<vmem>>, vector<8x128xf32>
    %28 = vector.shape_cast %26 : vector<16x128xf32> to vector<2x8x128xf32>
    %cst_10 = arith.constant dense<0.000000e+00> : vector<8x128xf32>
    %29 = vector.multi_reduction <add>, %28, %cst_10 [0] : vector<2x8x128xf32> to vector<8x128xf32>
    %30 = arith.addf %27, %29 : vector<8x128xf32>
    %c0_11 = arith.constant 0 : index
    %c0_12 = arith.constant 0 : index
    %31 = vector.load %arg4[%c0_11, %c0_12] : memref<8x128xf32, #tpu.memory_space<vmem>>, vector<8x128xf32>
    tpu.vector_store %arg4[%c0_11, %c0_12], %30 {strides = array<i32>} : memref<8x128xf32, #tpu.memory_space<vmem>>, vector<8x128xf32>,
    %c0_i32_13 = arith.constant 0 : i32
    %32 = arith.cmpi eq, %arg0, %c0_i32_13 : i32
    %33 = arith.extui %32 : i1 to i32
    %c0_i32_14 = arith.constant 0 : i32
    %34 = arith.cmpi ne, %33, %c0_i32_14 : i32
    scf.if %34 {
      %c0_15 = arith.constant 0 : index
      %c0_16 = arith.constant 0 : index
      %35 = vector.load %arg4[%c0_15, %c0_16] : memref<8x128xf32, #tpu.memory_space<vmem>>, vector<8x128xf32>
      %36 = vector.shape_cast %35 : vector<8x128xf32> to vector<1x8x128xf32>
      %cst_17 = arith.constant dense<0.000000e+00> : vector<1xf32>
      %37 = vector.multi_reduction <add>, %36, %cst_17 [1, 2] : vector<1x8x128xf32> to vector<1xf32>
      %38 = vector.shape_cast %37 : vector<1xf32> to vector<1x1x1xf32>
      %39 = vector.extract %38[0, 0, 0] : f32 from vector<1x1x1xf32>
      %40 = vector.broadcast %39 : f32 to vector<1x1xf32>
      %cst_18 = arith.constant 4.8828125E-4 : f32
      %41 = vector.broadcast %cst_18 : f32 to vector<1x1xf32>
      %42 = arith.mulf %40, %41 : vector<1x1xf32>
      %c0_19 = arith.constant 0 : index
      %c0_20 = arith.constant 0 : index
      %43 = vector.load %arg3[%c0_19, %c0_20] : memref<1x1xf32, #tpu.memory_space<vmem>>, vector<1x1xf32>
      tpu.vector_store %arg3[%c0_19, %c0_20], %42 {strides = array<i32>} : memref<1x1xf32, #tpu.memory_space<vmem>>, vector<1x1xf32>,
    } else {
    }
    return
  }
  func.func @transform_0(%arg0: i32) -> (i32, i32) {
    %c0_i32 = arith.constant 0 : i32
    %c0_i32_0 = arith.constant 0 : i32
    return %arg0, %c0_i32 : i32, i32
  }
  func.func @transform_1(%arg0: i32) -> (i32, i32) {
    %c0_i32 = arith.constant 0 : i32
    %c0_i32_0 = arith.constant 0 : i32
    return %arg0, %c0_i32 : i32, i32
  }
  func.func @transform_2(%arg0: i32) -> (i32, i32) {
    %c0_i32 = arith.constant 0 : i32
    %c0_i32_0 = arith.constant 0 : i32
    %c0_i32_1 = arith.constant 0 : i32
    return %c0_i32, %c0_i32_0 : i32, i32
  }
}

</mosaic_0001>

<bundles_post_ra>
// kernel: tpu_custom_call.1
= control target key start
LH: loop header
LB: loop body
LE: loop exit
PB: predicated region body
PF: predicated region fallthrough
CT: control target
= control target key end

     0   :  { %7 = vsyncpa [#allocation4], 0  ;;  %s315_s0 = inlined_call_operand.hbm [shape: f32[16,128], index: 0, kind: input, shape index: {}]   ;;  %s316_s1 = inlined_call_operand.hbm [shape: f32[16,128], index: 1, kind: input, shape index: {}]   ;;  %s317_s2 = inlined_call_operand.hbm [shape: f32[1,1], index: 2, kind: output, shape index: {}]  }
   0x1   :  { %8 = vsyncpa [#allocation7], 0 }
   0x2   :  { %9 = vsyncpa [#allocation5], 0  ;;  %s247_s9 = smov [#allocation3]   ;;  %s175_s13 = scalar_lea.hbm %s315_s0, 256 }
   0x3   :  { %s15_s10 = sshll.u32 %s247_s9, 4  ;;  %p176_p0 = scmp.ne.s32.totalorder %s315_s0, %s175_s13  ;;  %s16_s10 = int_to_ptr.vmem [resolvable:$true] %s15_s10 }
   0x4   :  { %p179_p1 = scmp.lt.u32.totalorder %s175_s13, %s315_s0 }
   0x6   :  { %p181_p2 = pnand %p179_p1, %p176_p0 }
   0x8   :  { %184 = shalt.err (!%p181_p2)
}
   0x9   :  { %s185_s18 = scalar_lea.vmem %s16_s10, 256  ;;  %p190_p4 = scmp.lt.s32.totalorder %s16_s10, %s16_s10 }
   0xa   :  { %p186_p3 = scmp.ne.s32.totalorder %s16_s10, %s185_s18  ;;  %p191_p5 = scmp.lt.s32.totalorder %s185_s18, %s185_s18 }
   0xc   :  { %p192_p6 = por %p191_p5, %p190_p4 }
   0xe   :  { %p193_p7 = pnand %p192_p6, %p186_p3 }
  0x10   :  { %196 = shalt.err (!%p193_p7)
}
  0x11   :  { %s248_s19 = smov 128   ;;  %s249_s20 = smov 8  }
  0x12   :  { %21 = dma.hbm_to_vmem [thread:$0]  %s315_s0, 256, %s16_s10, [#allocation4], %s248_s19, %s248_s19, %s249_s20  }
  0x13   :  { %s250_s23 = smov [#allocation6]   ;;  %s197_s27 = scalar_lea.hbm %s316_s1, 256 }
  0x14   :  { %s27_s24 = sshll.u32 %s250_s23, 4  ;;  %p198_p8 = scmp.ne.s32.totalorder %s316_s1, %s197_s27  ;;  %s28_s24 = int_to_ptr.vmem [resolvable:$true] %s27_s24 }
  0x15   :  { %p201_p9 = scmp.lt.u32.totalorder %s197_s27, %s316_s1 }
  0x17   :  { %p203_p10 = pnand %p201_p9, %p198_p8 }
  0x19   :  { %206 = shalt.err (!%p203_p10)
}
  0x1a   :  { %s207_s4 = scalar_lea.vmem %s28_s24, 256  ;;  %p212_p12 = scmp.lt.s32.totalorder %s28_s24, %s28_s24 }
  0x1b   :  { %p208_p11 = scmp.ne.s32.totalorder %s28_s24, %s207_s4  ;;  %p213_p13 = scmp.lt.s32.totalorder %s207_s4, %s207_s4 }
  0x1d   :  { %p214_p0 = por %p213_p13, %p212_p12 }
  0x1f   :  { %p215_p1 = pnand %p214_p0, %p208_p11 }
  0x21   :  { %218 = shalt.err (!%p215_p1)
}
  0x22   :  { %33 = dma.hbm_to_vmem [thread:$0]  %s316_s1, 256, %s28_s24, [#allocation7], %s248_s19, %s248_s19, %s249_s20  }
  0x23   :  { %241 = dma.done.wait [#allocation4], 256  }
  0x24   :  { %242 = vsyncadd [#allocation4], 4294967040 }
  0x25   :  { %243 = dma.done.wait [#allocation7], 256  }
  0x26   :  { %244 = vsyncadd [#allocation7], 4294967040  ;;  %v45_v0 = vld [vmem:[#allocation3] sm:$0xff]  ;;  %v46_v1 = vld [vmem:[#allocation3 + $0x8] sm:$0xff]  ;;  %s251_s1 = smov [#allocation8]   ;;  %vm134_vm8 = vcmask 0  }
  0x27   :  { %v49_v2 = vand.u32 2147483647, %v45_v0  ;;  %v50_v3 = vand.u32 2147483647, %v46_v1  ;;  %vm83_vm0 = vcmp.ge.f32.partialorder %v45_v0, 0.0  ;;  %vm84_vm1 = vcmp.ge.f32.partialorder %v46_v1, 0.0 }
  0x28   :  { %v47_v15 = vld [vmem:[#allocation6] sm:$0xff]  ;;  %v48_v17 = vld [vmem:[#allocation6 + $0x8] sm:$0xff]  ;;  %v57_v32 = vmax.f32 %v45_v0, 0.0  ;;  %v58_v33 = vmax.f32 %v46_v1, 0.0  ;;  %s142_s6 = sshll.u32 %s251_s1, 4  ;;  %s143_s6 = int_to_ptr.vmem [resolvable:$true] %s142_s6 }
  0x29   :  { %v51_v4 = vsub.f32 0.0, %v49_v2  ;;  %v52_v5 = vsub.f32 0.0, %v50_v3  ;;  %v59_v34 = vmul.f32 %v47_v15, %v45_v0  ;;  %v60_v35 = vmul.f32 %v48_v17, %v46_v1  ;;  %s219_s8 = scalar_lea.vmem %s143_s6, 16  ;;  %s223_s9 = scalar_lea.vmem %s143_s6, 32 }
  0x2a   :  { %p220_p2 = scmp.ne.s32.totalorder %s143_s6, %s219_s8  ;;  %p224_p3 = scmp.lt.s32.totalorder %s143_s6, %s143_s6 }
  0x2b   :  { %v53_v6 = vmul.f32 1.442695, %v51_v4  ;;  %v55_v7 = vmul.f32 1.442695, %v52_v5  ;;  %v61_v42 = vsub.f32 %v57_v32, %v59_v34  ;;  %v62_v43 = vsub.f32 %v58_v33, %v60_v35  ;;  %p225_p4 = scmp.lt.s32.totalorder %s223_s9, %s219_s8 }
  0x2d   :  { %159 = vpow2.f32 %v53_v6  ;;  %p226_p5 = por %p225_p4, %p224_p3 }
  0x2e   :  { %161 = vpow2.f32 %v55_v7 }
  0x2f   :  { %p227_p6 = pnand %p226_p5, %p220_p2 }
  0x37   :  { %v160_v8 = vpop.eup %159 }
  0x38   :  { %v162_v9 = vpop.eup %161  ;;  %v63_v10 = vadd.f32 1.0, %v160_v8  ;;  %v85_v12 = vsel %vm83_vm0, 1.0, %v160_v8  ;;  %v66_v22 = vmul.f32 -0.5, %v160_v8  ;;  %v69_v30 = vand.u32 2147483647, %v160_v8 }
  0x39   :  { %v72_v11 = vadd.f32 1.0, %v162_v9  ;;  %v86_v13 = vsel %vm84_vm1, 1.0, %v162_v9  ;;  %v75_v23 = vmul.f32 -0.5, %v162_v9  ;;  %v78_v31 = vand.u32 2147483647, %v162_v9 }
  0x3a   :  { %163 = vrcp.f32 %v63_v10  ;;  %v67_v27 = vadd.f32 1.0, %v66_v22  ;;  %vm291_vm2 = vcmp.lt.f32.partialorder %v69_v30, 0.0004427343 }
  0x3b   :  { %165 = vrcp.f32 %v72_v11  ;;  %v76_v28 = vadd.f32 1.0, %v75_v23  ;;  %vm295_vm3 = vcmp.lt.f32.partialorder %v78_v31, 0.0004427343 }
  0x3c   :  { %167 = vlog2.f32 %v63_v10  ;;  %v68_v37 = vmul.f32 %v160_v8, %v67_v27 }
  0x3d   :  { %169 = vlog2.f32 %v72_v11  ;;  %v77_v39 = vmul.f32 %v162_v9, %v76_v28 }
  0x44   :  { %v164_v14 = vpop.eup %163 }
  0x45   :  { %v166_v16 = vpop.eup %165  ;;  %v90_v18 = vmul.f32 %v164_v14, %v85_v12 }
  0x46   :  { %v92_v19 = vmul.f32 %v166_v16, %v86_v13  ;;  %v168_v26 = vpop.eup %167 }
  0x47   :  { %v93_v20 = vsub.f32 %v47_v15, %v90_v18  ;;  %v170_v29 = vpop.eup %169  ;;  %v65_v36 = vmul.f32 0.6931472, %v168_v26 }
  0x48   :  { %v94_v21 = vsub.f32 %v48_v17, %v92_v19  ;;  %v74_v38 = vmul.f32 0.6931472, %v170_v29 }
  0x49   :  { %v95_v24 = vand.u32 2147483647, %v93_v20  ;;  %v71_v45 = vsel %vm291_vm2, %v68_v37, %v65_v36 }
  0x4a   :  { %v96_v25 = vand.u32 2147483647, %v94_v21  ;;  %v80_v46 = vsel %vm295_vm3, %v77_v39, %v74_v38  ;;  %v81_v52 = vadd.f32 %v71_v45, %v61_v42 }
  0x4b   :  { %171 = vrsqrt.f32 %v95_v24  ;;  %vm99_vm4 = vcmp.eq.f32.partialorder %v95_v24, inf  ;;  %v102_v47 = vand.u32 2147483648, %v95_v24  ;;  %vm101_vm5 = vcmp.eq.f32.partialorder %v95_v24, 0.0 }
  0x4c   :  { %173 = vrsqrt.f32 %v96_v25  ;;  %vm106_vm6 = vcmp.eq.f32.partialorder %v96_v25, inf  ;;  %v109_v50 = vand.u32 2147483648, %v96_v25  ;;  %vm108_vm7 = vcmp.eq.f32.partialorder %v96_v25, 0.0 }
  0x4d   :  { %v82_v54 = vadd.f32 %v80_v46, %v62_v43 }
  0x55   :  { %v172_v44 = vpop.eup %171 }
  0x56   :  { %v174_v48 = vpop.eup %173  ;;  %v98_v49 = vmul.f32 %v172_v44, %v95_v24 }
  0x57   :  { %v105_v51 = vmul.f32 %v174_v48, %v96_v25 }
  0x58   :  { %v100_v53 = vsel %vm99_vm4, %v95_v24, %v98_v49 }
  0x59   :  { %v103_v55 = vsel %vm101_vm5, %v102_v47, %v100_v53  ;;  %v107_v56 = vsel %vm106_vm6, %v96_v25, %v105_v51 }
  0x5a   :  { %v110_v57 = vsel %vm108_vm7, %v109_v50, %v107_v56  ;;  %v111_v58 = vmul.f32 %v103_v55, %v95_v24 }
  0x5b   :  { %v112_v59 = vmul.f32 %v110_v57, %v96_v25 }
  0x5c   :  { %v113_v60 = vmul.f32 %v111_v58, %v81_v52 }
  0x5d   :  { %v114_v61 = vmul.f32 %v112_v59, %v82_v54 }
  0x5f   :  { %v116_v62 = vadd.f32 %v114_v61, %v113_v60 }
  0x61   :  { %123 = vadd.xlane.f32.xlu0 %v116_v62 }
  0xee   :  { %v124_v63 = vpop.xlane.xlu0 %123 }
  0xef   :  { %v125_v0 = vrot.slane %v124_v63, 4 }
  0xf1   :  { %v126_v1 = vadd.f32 %v125_v0, %v124_v63 }
  0xf3   :  { %v127_v2 = vrot.slane %v126_v1, 2 }
  0xf5   :  { %v128_v3 = vadd.f32 %v127_v2, %v126_v1 }
  0xf7   :  { %v129_v4 = vrot.slane %v128_v3, 1 }
  0xf9   :  { %v130_v5 = vadd.f32 %v129_v4, %v128_v3 }
  0xfb   :  { %152 = vpush %v130_v5 }
 0x12c   :  { %s153_s7 = spop %152 }
 0x12d   :  { %v132_v6 = vstv %s153_s7 }
 0x12e   :  { %v133_v7 = vmul.f32 0.00048828125, %v132_v6 }
 0x130   :  { %135 = vst.msk [vmem:[#allocation8] sm:$0x1] %vm134_vm8, %v133_v7 }
 0x131   :  { %230 = shalt.err (!%p227_p6)
}
 0x132   :  { %s231_s12 = scalar_lea.hbm %s317_s2, 16 }
 0x133   :  { %p232_p7 = scmp.ne.s32.totalorder %s317_s2, %s231_s12  ;;  %p235_p8 = scmp.lt.u32.totalorder %s231_s12, %s317_s2 }
 0x135   :  { %p237_p9 = pnand %p235_p8, %p232_p7 }
 0x137   :  { %240 = shalt.err (!%p237_p9)
}
 0x138   :  { %145 = dma.vmem_to_hbm [thread:$0]  %s143_s6, 16, %s317_s2, [#allocation5]  }
 0x139   :  { %245 = dma.done.wait [#allocation5], 16  }
 0x13a   :  { %246 = vsyncadd [#allocation5], 4294967280 }
 0x13b   :  { %149 = vsyncpa [#allocation4], 1 }
 0x13c   :  { %150 = vsyncpa [#allocation7], 1 }
 0x13d   :  { %151 = vsyncpa [#allocation5], 1 }

</bundles_post_ra>
